<compile_context>
chip_gen: v7x
topology: tpu7x:2x2x1
jax: 0.10.0
libtpu: 0.0.40
codegen_flags: <defaults>
</compile_context>

<pallas_src>
import math
import functools

import jax
import jax.numpy as jnp
from jax import lax
from jax.experimental import pallas as pl
from jax.experimental.pallas import tpu as pltpu


# ----------------------------------------------------------------------------
# Pallas kernel: fused power / sigma / scale / multiply on interleaved lanes
# ----------------------------------------------------------------------------
def _clipping_kernel(x_ref, y_ref, *, cr, inv_t, n_valid_lanes):
    x = x_ref[...].astype(jnp.float32)                  # (BR, L_blk) interleaved
    x2 = x * x
    l_blk = x2.shape[-1]
    lane = lax.broadcasted_iota(jnp.int32, x2.shape, 1)

    # Per-sample |x|^2: pair each even (re) lane with the next odd (im) lane.
    # Rolls run on the XLU, the select on the VPU — free under the DMA.
    nxt = pltpu.roll(x2, shift=l_blk - 1, axis=1)       # x2[lane + 1] at lane
    prv = pltpu.roll(x2, shift=1, axis=1)                # x2[lane - 1] at lane
    pwr = x2 + jnp.where((lane & 1) == 0, nxt, prv)

    # sigma = sqrt(mean(x^2 over (T,2)) * 2) = sqrt(sum(x^2 over 2T lanes) / T).
    # Mask the (uninitialized) padding lanes out of the reduction.
    x2m = jnp.where(lane < n_valid_lanes, x2, 0.0)
    sigma = jnp.sqrt(jnp.sum(x2m, axis=1, keepdims=True) * inv_t)   # (BR, 1)

    # scale = min(sigma * CR / amp, 1); rsqrt goes to the EUP slot.
    scale = jnp.minimum((sigma * cr) * lax.rsqrt(pwr), 1.0)

    y_ref[...] = (x * scale).astype(y_ref.dtype)


# ----------------------------------------------------------------------------
# Wrapper
# ----------------------------------------------------------------------------
def _round_up(a, b):
    return (a + b - 1) // b * b


_TARGET_BLOCK_ELEMS = 1 << 20            # ~1M f32/block -> ~16 MiB double-buffered in+out
_VMEM_LIMIT_BYTES = 32 * 1024 * 1024     # fits v5e (16 MiB default raised), v6e, v7x budgets


def clipping_pallas(x, CR):
    """Clipping.forward for x of shape (..., T, 2); f32 or bf16 streamed natively."""
    if x.dtype not in (jnp.float32, jnp.bfloat16):
        x = x.astype(jnp.float32)

    *lead, T, two = x.shape
    assert two == 2, "last dim must be the real/imag pair"
    R = math.prod(lead) if lead else 1
    L = 2 * T                                           # interleaved lane width

    # Contiguous, copy-free view: fold real/imag into the lane axis.
    x2d = x.reshape(R, L)

    L_blk = _round_up(L, 128)                           # lane-dense block; array stays (R, L)

    # Row-block sizing: big enough to stream HBM, small enough for VMEM on every
    # generation, and >=2 "parallel" grid blocks (v7x megacore) when R allows.
    if R <= 8:
        BR = R                                          # block dim == full dim is legal
    else:
        br_cap = max(8, (_TARGET_BLOCK_ELEMS // L_blk) // 8 * 8)
        br_half = max(8, _round_up((R + 1) // 2, 8))
        BR = max(8, min(br_cap, br_half, _round_up(R, 8)))
    # TODO(synk): for very large T (one row block no longer fits VMEM) an
    # 'arbitrary' lane-tile grid axis with a two-pass sum-of-squares is needed.
    grid_rows = pl.cdiv(R, BR)

    kernel = functools.partial(
        _clipping_kernel, cr=float(CR), inv_t=1.0 / float(T), n_valid_lanes=L)

    itemsize = jnp.dtype(x.dtype).itemsize
    cost = pl.CostEstimate(
        flops=8 * R * L,
        transcendentals=R * L + R,
        bytes_accessed=2 * R * L * itemsize,
    )

    y2d = pl.pallas_call(
        kernel,
        out_shape=jax.ShapeDtypeStruct((R, L), x.dtype),
        grid=(grid_rows,),
        in_specs=[pl.BlockSpec((BR, L_blk), lambda i: (i, 0))],
        out_specs=pl.BlockSpec((BR, L_blk), lambda i: (i, 0)),
        compiler_params=pltpu.CompilerParams(
            dimension_semantics=("parallel",),
            vmem_limit_bytes=_VMEM_LIMIT_BYTES,
        ),
        cost_estimate=cost,
        # TODO(synk): pass input_output_aliases={0: 0} when the caller can donate x
        # (in-place overwrite removes the output allocation from the working set).
    )(x2d)

    return y2d.reshape(x.shape)


# ----------------------------------------------------------------------------
# Pure-JAX reference (mirror of the PyTorch forward)
# ----------------------------------------------------------------------------
def clipping_ref(x, CR):
    amp = jnp.sqrt(jnp.sum(x ** 2, axis=-1, keepdims=True))
    sigma = jnp.sqrt(jnp.mean(x ** 2, axis=(-2, -1), keepdims=True) * 2)
    ratio = sigma * CR / amp
    scale = jnp.minimum(ratio, jnp.ones_like(ratio))
    # TODO(synk): the torch.no_grad() bias trick only alters the backward pass;
    # the forward value is exactly x * scale.
    return x * scale


# ----------------------------------------------------------------------------
if __name__ == "__main__":
    class Opt:
        pass

    opt = Opt()
    opt.P, opt.S, opt.M, opt.K, opt.N_pilot = 2, 2, 16, 4, 1
    opt.CR = 1.0

    N = 2
    T = (opt.S + opt.N_pilot) * (opt.M + opt.K)        # 60 time samples per row

    key = jax.random.PRNGKey(0)
    x = jax.random.normal(key, (N, opt.P, T, 2), jnp.float32)

    y = jax.block_until_ready(clipping_pallas(x, opt.CR))
    y_ref = clipping_ref(x, opt.CR)
    assert y.shape == x.shape
    assert jnp.allclose(y, y_ref, atol=1e-5, rtol=1e-5)

    # second case: multi-block "parallel" grid with a partial final row block
    x2 = jax.random.normal(jax.random.PRNGKey(1), (5, 4, T, 2), jnp.float32)
    y2 = jax.block_until_ready(clipping_pallas(x2, 0.8))
    assert jnp.allclose(y2, clipping_ref(x2, 0.8), atol=1e-5, rtol=1e-5)

    print("KERNEL_OK")
</pallas_src>

<mosaic_0001>
module attributes {stable_mosaic.version = 11 : i64} {
  func.func @_clipping_kernel(%arg0: i32, %arg1: memref<4x128xf32, #tpu.memory_space<vmem>>, %arg2: memref<4x128xf32, #tpu.memory_space<vmem>>) attributes {dimension_semantics = [#tpu.dimension_semantics<parallel>], iteration_bounds = array<i64: 1>, scalar_prefetch = 0 : i64, scratch_operands = 0 : i64, tpu.core_type = #tpu.core_type<tc>, window_params = [{transform_indices = @transform_0, window_bounds = array<i64: 4, 128>}, {transform_indices = @transform_1, window_bounds = array<i64: 4, 128>}]} {
    %c0 = arith.constant 0 : index
    %c0_0 = arith.constant 0 : index
    %0 = vector.load %arg1[%c0, %c0_0] : memref<4x128xf32, #tpu.memory_space<vmem>>, vector<4x128xf32>
    %1 = arith.mulf %0, %0 : vector<4x128xf32>
    %2 = tpu.iota {dimensions = array<i32: 1>} : vector<4x128xi32>
    %c127_i32 = arith.constant 127 : i32
    %3 = tpu.dynamic_rotate %1 by %c127_i32 dim 1 : vector<4x128xf32>, i32 -> vector<4x128xf32>
    %c1_i32 = arith.constant 1 : i32
    %4 = tpu.dynamic_rotate %1 by %c1_i32 dim 1 : vector<4x128xf32>, i32 -> vector<4x128xf32>
    %c1_i32_1 = arith.constant 1 : i32
    %5 = vector.broadcast %c1_i32_1 : i32 to vector<4x128xi32>
    %6 = arith.andi %2, %5 : vector<4x128xi32>
    %c0_i32 = arith.constant 0 : i32
    %7 = vector.broadcast %c0_i32 : i32 to vector<4x128xi32>
    %8 = arith.cmpi eq, %6, %7 : vector<4x128xi32>
    %9 = arith.select %8, %3, %4 : vector<4x128xi1>, vector<4x128xf32>
    %10 = arith.addf %1, %9 : vector<4x128xf32>
    %c120_i32 = arith.constant 120 : i32
    %11 = vector.broadcast %c120_i32 : i32 to vector<4x128xi32>
    %12 = arith.cmpi slt, %2, %11 : vector<4x128xi32>
    %cst = arith.constant 0.000000e+00 : f32
    %13 = vector.broadcast %cst : f32 to vector<4x128xf32>
    %14 = arith.select %12, %1, %13 : vector<4x128xi1>, vector<4x128xf32>
    %cst_2 = arith.constant dense<0.000000e+00> : vector<4xf32>
    %15 = vector.multi_reduction <add>, %14, %cst_2 [1] : vector<4x128xf32> to vector<4xf32>
    %16 = vector.shape_cast %15 : vector<4xf32> to vector<4x1xf32>
    %cst_3 = arith.constant 0.0166666675 : f32
    %17 = vector.broadcast %cst_3 : f32 to vector<4x1xf32>
    %18 = arith.mulf %16, %17 : vector<4x1xf32>
    %19 = math.sqrt %18 : vector<4x1xf32>
    %cst_4 = arith.constant 1.000000e+00 : f32
    %20 = vector.broadcast %cst_4 : f32 to vector<4x1xf32>
    %21 = arith.mulf %19, %20 : vector<4x1xf32>
    %22 = math.rsqrt %10 : vector<4x128xf32>
    %23 = vector.broadcast %21 : vector<4x1xf32> to vector<4x128xf32>
    %24 = arith.mulf %23, %22 : vector<4x128xf32>
    %cst_5 = arith.constant 1.000000e+00 : f32
    %25 = vector.broadcast %cst_5 : f32 to vector<4x128xf32>
    %26 = arith.minimumf %24, %25 : vector<4x128xf32>
    %27 = arith.mulf %0, %26 : vector<4x128xf32>
    %c0_6 = arith.constant 0 : index
    %c0_7 = arith.constant 0 : index
    %28 = vector.load %arg2[%c0_6, %c0_7] : memref<4x128xf32, #tpu.memory_space<vmem>>, vector<4x128xf32>
    tpu.vector_store %arg2[%c0_6, %c0_7], %27 {strides = array<i32>} : memref<4x128xf32, #tpu.memory_space<vmem>>, vector<4x128xf32>,
    return
  }
  func.func @transform_0(%arg0: i32) -> (i32, i32) {
    %c0_i32 = arith.constant 0 : i32
    %c0_i32_0 = arith.constant 0 : i32
    return %arg0, %c0_i32 : i32, i32
  }
  func.func @transform_1(%arg0: i32) -> (i32, i32) {
    %c0_i32 = arith.constant 0 : i32
    %c0_i32_0 = arith.constant 0 : i32
    return %arg0, %c0_i32 : i32, i32
  }
}

</mosaic_0001>

<bundles_post_ra>
// kernel: tpu_custom_call.1
= control target key start
LH: loop header
LB: loop body
LE: loop exit
PB: predicated region body
PF: predicated region fallthrough
CT: control target
= control target key end

     0   :  { %6 = vsyncpa [#allocation3], 0  ;;  %s161_s0 = inlined_call_operand.hbm [shape: f32[4,120], index: 0, kind: input, shape index: {}]   ;;  %s162_s1 = inlined_call_operand.hbm [shape: f32[4,120], index: 1, kind: output, shape index: {}]  }
   0x1   :  { %7 = vsyncpa [#allocation4], 0  ;;  %s123_s6 = smov [#allocation2]   ;;  %s75_s10 = scalar_lea.hbm %s161_s0, 64 }
   0x2   :  { %s14_s7 = sshll.u32 %s123_s6, 4  ;;  %p76_p0 = scmp.ne.s32.totalorder %s161_s0, %s75_s10  ;;  %s15_s7 = int_to_ptr.vmem [resolvable:$true] %s14_s7 }
   0x3   :  { %p79_p1 = scmp.lt.u32.totalorder %s75_s10, %s161_s0 }
   0x5   :  { %p81_p2 = pnand %p79_p1, %p76_p0 }
   0x7   :  { %84 = shalt.err (!%p81_p2)
}
   0x8   :  { %s85_s15 = scalar_lea.vmem %s15_s7, 64  ;;  %p90_p4 = scmp.lt.s32.totalorder %s15_s7, %s15_s7 }
   0x9   :  { %p86_p3 = scmp.ne.s32.totalorder %s15_s7, %s85_s15  ;;  %p91_p5 = scmp.lt.s32.totalorder %s85_s15, %s85_s15 }
   0xb   :  { %p92_p6 = por %p91_p5, %p90_p4 }
   0xd   :  { %p93_p7 = pnand %p92_p6, %p86_p3 }
   0xf   :  { %96 = shalt.err (!%p93_p7)
}
  0x10   :  { %17 = dma.hbm_to_vmem [thread:$0]  %s161_s0, 64, %s15_s7, [#allocation3]  }
  0x11   :  { %119 = dma.done.wait [#allocation3], 64  }
  0x12   :  { %120 = vsyncadd [#allocation3], 4294967232  ;;  %v23_v0 = vlaneseq  ;;  %v21_v2 = vld [vmem:[#allocation2] sm:$0xf]  ;;  %vm35_vm1 = vcmask 1043456   ;;  %s124_s18 = smov 1  }
  0x13   :  { %v22_v3 = vmul.f32 %v21_v2, %v21_v2  ;;  %s125_s19 = smov 127   ;;  %s126_s0 = smov [#allocation5]  }
  0x14   :  { %v24_v1 = vand.u32 127, %v23_v0  ;;  %s58_s20 = sshll.u32 %s126_s0, 4  ;;  %s59_s20 = int_to_ptr.vmem [resolvable:$true] %s58_s20 }
  0x15   :  { %27 = vrot.lane.b32.xlu1 %v22_v3, %s124_s18  ;;  %s97_s21 = scalar_lea.vmem %s59_s20, 64  ;;  %p102_p9 = scmp.lt.s32.totalorder %s59_s20, %s59_s20 }
  0x16   :  { %vm33_vm0 = vcmp.lt.s32.totalorder %v24_v1, 120  ;;  %v29_v6 = vand.u32 1, %v24_v1  ;;  %p98_p8 = scmp.ne.s32.totalorder %s59_s20, %s97_s21  ;;  %p103_p10 = scmp.lt.s32.totalorder %s97_s21, %s97_s21 }
  0x17   :  { %v34_v4 = vsel %vm33_vm0, %v22_v3, 0.0 }
  0x18   :  { %v36_v5 = vsel %vm35_vm1, %v34_v4, 0.0  ;;  %vm30_vm2 = vcmp.eq.s32.totalorder %v29_v6, 0  ;;  %p104_p11 = por %p103_p10, %p102_p9 }
  0x19   :  { %37 = vadd.xlane.f32.xlu0 %v36_v5 }
  0x1a   :  { %p105_p12 = pnand %p104_p11, %p98_p8 }
  0x2f   :  { %25 = vrot.lane.b32.xlu0 %v22_v3, %s125_s19 }
  0x87   :  { %v28_v9 = vpop.permute.xlu1 %27 }
  0xa6   :  { %v38_v7 = vpop.xlane.xlu0 %37 }
  0xa7   :  { %v39_v8 = vmul.f32 0.016666668, %v38_v7 }
  0xa9   :  { %71 = vrsqrt.f32 %v39_v8  ;;  %vm42_vm3 = vcmp.eq.f32.partialorder %v39_v8, inf  ;;  %v45_v15 = vand.u32 2147483648, %v39_v8  ;;  %vm44_vm4 = vcmp.eq.f32.partialorder %v39_v8, 0.0 }
  0xaa   :  { %v26_v10 = vpop.permute.xlu0 %25 }
  0xab   :  { %v31_v11 = vsel %vm30_vm2, %v26_v10, %v28_v9 }
  0xac   :  { %v32_v12 = vadd.f32 %v31_v11, %v22_v3 }
  0xae   :  { %73 = vrsqrt.f32 %v32_v12 }
  0xb3   :  { %v72_v13 = vpop.eup %71 }
  0xb4   :  { %v41_v14 = vmul.f32 %v72_v13, %v39_v8 }
  0xb6   :  { %v43_v16 = vsel %vm42_vm3, %v39_v8, %v41_v14 }
  0xb7   :  { %v46_v17 = vsel %vm44_vm4, %v45_v15, %v43_v16 }
  0xb8   :  { %v74_v18 = vpop.eup %73 }
  0xb9   :  { %v48_v19 = vmul.f32 %v74_v18, %v46_v17 }
  0xbb   :  { %v49_v20 = vmin.f32 %v48_v19, 1.0 }
  0xbd   :  { %v50_v21 = vmul.f32 %v49_v20, %v21_v2 }
  0xbf   :  { %51 = vst [vmem:[#allocation5] sm:$0xf] %v50_v21 }
  0xc0   :  { %108 = shalt.err (!%p105_p12)
}
  0xc1   :  { %s109_s24 = scalar_lea.hbm %s162_s1, 64 }
  0xc2   :  { %p110_p13 = scmp.ne.s32.totalorder %s162_s1, %s109_s24  ;;  %p113_p0 = scmp.lt.u32.totalorder %s109_s24, %s162_s1 }
  0xc4   :  { %p115_p1 = pnand %p113_p0, %p110_p13 }
  0xc6   :  { %118 = shalt.err (!%p115_p1)
}
  0xc7   :  { %61 = dma.vmem_to_hbm [thread:$0]  %s59_s20, 64, %s162_s1, [#allocation4]  }
  0xc8   :  { %121 = dma.done.wait [#allocation4], 64  }
  0xc9   :  { %122 = vsyncadd [#allocation4], 4294967232 }
  0xca   :  { %65 = vsyncpa [#allocation3], 1 }
  0xcb   :  { %66 = vsyncpa [#allocation4], 1 }

</bundles_post_ra>
